<compile_context>
chip_gen: v7x
topology: tpu7x:2x2x1
jax: 0.10.0
libtpu: 0.0.40
codegen_flags: <defaults>
</compile_context>

<pallas_src>
import functools
import math

import jax
import jax.numpy as jnp
from jax import lax
from jax.experimental import pallas as pl
from jax.experimental.pallas import tpu as pltpu


_VMEM_LIMIT_BYTES = 32 * 1024 * 1024   # explicit: v5e scoped default is only 16 MiB
_INIT_TILE_BYTES = 8 * 1024 * 1024     # write-only init kernel: 2 out buffers -> 16 MiB
_NORM_TILE_BYTES = 4 * 1024 * 1024     # read+write normalize: 4 buffers -> 16 MiB


def _round_up(x, m):
    return ((x + m - 1) // m) * m


def _cdiv(a, b):
    return -(-a // b)


def _i32(x):
    """Python int -> int32 constant with 2**32 wraparound (for hash constants)."""
    x = x & 0xFFFFFFFF
    if x >= 2 ** 31:
        x -= 2 ** 32
    return jnp.int32(x)


def _choose_row_tile(n_rows, n_cols, itemsize, target_bytes):
    """Balanced row tile: multiple of 8, ~target_bytes per VMEM buffer, and at
    least 2 grid steps when the table is big enough (v7x megacore sharding).
    Balancing (instead of a fixed cap) bounds edge-tile waste for awkward row
    counts."""
    row_bytes = max(1, n_cols * itemsize)
    tm_cap = max(8, (target_bytes // row_bytes) // 8 * 8)
    min_tiles = 2 if n_rows >= 16 else 1
    n_tiles = max(min_tiles, _cdiv(n_rows, tm_cap))
    tm = _round_up(_cdiv(n_rows, n_tiles), 8)
    tm = min(tm, _round_up(n_rows, 8))
    return tm


# ---------------------------------------------------------------------------
# In-kernel counter-hash PRNG (portable: plain int32 ops, no TPU-only prims)
# ---------------------------------------------------------------------------
def _hash_u32(x):
    """lowbias32-style integer hash; int32 mults wrap mod 2**32, shifts are logical."""
    x = x ^ lax.shift_right_logical(x, 16)
    x = x * _i32(0x7FEB352D)
    x = x ^ lax.shift_right_logical(x, 15)
    x = x * _i32(0x846CA68B)
    x = x ^ lax.shift_right_logical(x, 16)
    return x


def _tile_uniform01(seed, row0, shape, n_cols):
    """Per-element uniform [0,1) keyed on the GLOBAL (row, col) index, so the
    generated table does not depend on the tile size chosen per TPU generation."""
    rows = lax.broadcasted_iota(jnp.int32, shape, 0) + row0
    cols = lax.broadcasted_iota(jnp.int32, shape, 1)
    eid = rows * jnp.int32(n_cols) + cols
    h = _hash_u32(eid ^ (seed * _i32(0x9E3779B9)))
    mant = lax.shift_right_logical(h, 8)                      # 24 random bits, >= 0
    return mant.astype(jnp.float32) * jnp.float32(1.0 / (1 << 24))   # [0, 1)


# ---------------------------------------------------------------------------
# Pallas kernels
# ---------------------------------------------------------------------------
def _uniform_init_kernel(seed_ref, o_ref, *, bound, n_cols):
    """Write-only: o = uniform(-bound, bound). Used for the (large) entity table."""
    tm = o_ref.shape[0]
    row0 = pl.program_id(0) * tm
    u01 = _tile_uniform01(seed_ref[0], row0, o_ref.shape, n_cols)
    o_ref[...] = ((u01 * 2.0 - 1.0) * bound).astype(o_ref.dtype)


def _uniform_init_l2norm_kernel(seed_ref, o_ref, *, n_cols):
    """Fused: uniform draw + row-wise L2 normalize (single HBM write).
    The uniform bound cancels under the normalization, so it is not applied."""
    tm = o_ref.shape[0]
    row0 = pl.program_id(0) * tm
    u01 = _tile_uniform01(seed_ref[0], row0, o_ref.shape, n_cols)
    x = u01 * 2.0 - 1.0
    sumsq = jnp.sum(x * x, axis=-1, keepdims=True)
    inv = lax.rsqrt(jnp.maximum(sumsq, jnp.float32(1e-24)))   # EUP rsqrt, matches 1/max(||x||,1e-12)
    o_ref[...] = (x * inv).astype(o_ref.dtype)


def _l2_normalize_kernel(w_ref, o_ref):
    """Row-wise L2 normalize: o = w / max(||w||_2, 1e-12) (matches F.normalize)."""
    w = w_ref[...].astype(jnp.float32)
    sumsq = jnp.sum(w * w, axis=-1, keepdims=True)
    inv = lax.rsqrt(jnp.maximum(sumsq, jnp.float32(1e-24)))
    o_ref[...] = (w * inv).astype(o_ref.dtype)


# ---------------------------------------------------------------------------
# Wrappers
# ---------------------------------------------------------------------------
def uniform_init_embeddings(num_rows, num_cols, bound, seed, *, normalize=False,
                            dtype=jnp.float32):
    """In-kernel uniform(-bound, bound) init; optionally fused row L2-normalize."""
    itemsize = jnp.dtype(dtype).itemsize
    target = _NORM_TILE_BYTES if normalize else _INIT_TILE_BYTES
    tm = _choose_row_tile(num_rows, num_cols, itemsize, target)
    grid = (_cdiv(num_rows, tm),)

    if normalize:
        kernel = functools.partial(_uniform_init_l2norm_kernel, n_cols=num_cols)
    else:
        kernel = functools.partial(_uniform_init_kernel, bound=float(bound),
                                   n_cols=num_cols)

    seed_arr = jnp.asarray(seed, dtype=jnp.int32).reshape((1,))
    return pl.pallas_call(
        kernel,
        out_shape=jax.ShapeDtypeStruct((num_rows, num_cols), dtype),
        grid_spec=pltpu.PrefetchScalarGridSpec(
            num_scalar_prefetch=1,
            grid=grid,
            in_specs=[],
            # last block dim == full array dim -> legal even if not 128-aligned
            out_specs=pl.BlockSpec((tm, num_cols), lambda i, seed_ref: (i, 0)),
        ),
        compiler_params=pltpu.CompilerParams(
            dimension_semantics=("parallel",),
            vmem_limit_bytes=_VMEM_LIMIT_BYTES,
        ),
    )(seed_arr)


def l2_normalize_rows(w):
    """Row-wise L2 normalization, tiled over rows. No host-side pad/slice copies:
    edge row-blocks are handled by Pallas' masked writeback; the last block dim
    equals the full embedding dim so no column padding exists."""
    n, d = w.shape
    tm = _choose_row_tile(n, d, jnp.dtype(w.dtype).itemsize, _NORM_TILE_BYTES)
    grid = (_cdiv(n, tm),)
    return pl.pallas_call(
        _l2_normalize_kernel,
        out_shape=jax.ShapeDtypeStruct((n, d), w.dtype),
        grid=grid,
        in_specs=[pl.BlockSpec((tm, d), lambda i: (i, 0))],
        out_specs=pl.BlockSpec((tm, d), lambda i: (i, 0)),
        compiler_params=pltpu.CompilerParams(
            dimension_semantics=("parallel",),
            vmem_limit_bytes=_VMEM_LIMIT_BYTES,
        ),
    )(w)


def kg_embeddings_forward(entity_w, relation_w):
    """forward(): pure pass-through of the stored weight matrices (no kernel on
    purpose -- a copy kernel would only add HBM traffic for zero compute)."""
    return entity_w, relation_w


# ---------------------------------------------------------------------------
# Module-equivalent parameter construction
# ---------------------------------------------------------------------------
class KnowledgeGraphEmbeddingsPallas:
    def __init__(self, num_entities, num_relations, embedding_size, key,
                 pretrained_entity_embeddings=None,
                 pretrained_relation_embeddings=None):
        self.num_entities = num_entities
        self.num_relations = num_relations
        self.embedding_size = embedding_size

        k_ent, k_rel = jax.random.split(key)
        ent_seed = jax.random.randint(k_ent, (), 0, 2 ** 31 - 1)
        rel_seed = jax.random.randint(k_rel, (), 0, 2 ** 31 - 1)
        ent_bound = math.sqrt(6.0 / num_entities)
        rel_bound = math.sqrt(6.0 / num_relations)
        del rel_bound  # cancelled by the fused L2 normalization (as in PyTorch)

        # Entity table: nn.init.uniform_(-bound, bound) done entirely in-kernel
        # (counter-hash PRNG -> write-bound stream, no Threefry).
        # RNG stream differs from torch/jax.random; distribution matches.
        self.entity_embeddings = uniform_init_embeddings(
            num_entities, embedding_size, ent_bound, ent_seed, normalize=False)

        # Relation table: fused uniform init + F.normalize(p=2, dim=-1).
        self.relation_embeddings = uniform_init_embeddings(
            num_relations, embedding_size, 1.0, rel_seed, normalize=True)

        if pretrained_entity_embeddings is not None:
            self.entity_embeddings = jnp.asarray(pretrained_entity_embeddings)
        if pretrained_relation_embeddings is not None:
            self.relation_embeddings = jnp.asarray(pretrained_relation_embeddings)

    def forward(self):
        return kg_embeddings_forward(self.entity_embeddings, self.relation_embeddings)


# ---------------------------------------------------------------------------
if __name__ == "__main__":
    key = jax.random.PRNGKey(0)

    num_entities = 16
    num_relations = 8
    embedding_size = 32

    model = KnowledgeGraphEmbeddingsPallas(num_entities, num_relations,
                                           embedding_size, key)
    ent_w, rel_w = model.forward()
    ent_w = jax.block_until_ready(ent_w)
    rel_w = jax.block_until_ready(rel_w)

    # sanity checks (no file / network IO)
    assert ent_w.shape == (num_entities, embedding_size)
    assert rel_w.shape == (num_relations, embedding_size)
    assert bool(jnp.all(jnp.isfinite(ent_w)))
    assert bool(jnp.all(jnp.isfinite(rel_w)))

    # entity values are uniform within (-bound, bound) and non-degenerate
    ent_bound = math.sqrt(6.0 / num_entities)
    assert bool(jnp.all(jnp.abs(ent_w) <= ent_bound + 1e-6))
    assert float(jnp.std(ent_w)) > 0.0

    # relation rows are unit-norm after the fused init+normalize kernel
    norms = jnp.linalg.norm(rel_w.astype(jnp.float32), axis=-1)
    assert bool(jnp.allclose(norms, 1.0, atol=1e-5))

    # forward is an exact pass-through of the stored weights
    assert bool(jnp.array_equal(ent_w, model.entity_embeddings))
    assert bool(jnp.array_equal(rel_w, model.relation_embeddings))

    # standalone tiled L2-normalize kernel vs pure-JAX reference
    # (non-aligned shape exercises the edge-block / non-128 lane path)
    x = jax.random.normal(jax.random.PRNGKey(1), (37, 96), dtype=jnp.float32)
    y = jax.block_until_ready(l2_normalize_rows(x))
    y_ref = x / jnp.maximum(jnp.linalg.norm(x, axis=-1, keepdims=True), 1e-12)
    assert bool(jnp.allclose(y, y_ref, atol=1e-5, rtol=1e-5))

    print("KERNEL_OK")
</pallas_src>

<mosaic_0001>
module attributes {stable_mosaic.version = 11 : i64} {
  func.func @_uniform_init_kernel(%arg0: i32, %arg1: memref<1xi32, #tpu.memory_space<smem>>, %arg2: memref<8x32xf32, #tpu.memory_space<vmem>>) attributes {dimension_semantics = [#tpu.dimension_semantics<parallel>], iteration_bounds = array<i64: 2>, scalar_prefetch = 1 : i64, scratch_operands = 0 : i64, tpu.core_type = #tpu.core_type<tc>, window_params = [{transform_indices = @transform_0, window_bounds = array<i64: 8, 32>}]} {
    %c8_i32 = arith.constant 8 : i32
    %0 = arith.muli %arg0, %c8_i32 : i32
    %c0 = arith.constant 0 : index
    %1 = memref.load %arg1[%c0] : memref<1xi32, #tpu.memory_space<smem>>
    %2 = tpu.iota {dimensions = array<i32: 0>} : vector<8x32xi32>
    %3 = vector.broadcast %0 : i32 to vector<8x32xi32>
    %4 = arith.addi %2, %3 : vector<8x32xi32>
    %5 = tpu.iota {dimensions = array<i32: 1>} : vector<8x32xi32>
    %c32_i32 = arith.constant 32 : i32
    %6 = vector.broadcast %c32_i32 : i32 to vector<8x32xi32>
    %7 = arith.muli %4, %6 : vector<8x32xi32>
    %8 = arith.addi %7, %5 : vector<8x32xi32>
    %c-1640531527_i32 = arith.constant -1640531527 : i32
    %9 = arith.muli %1, %c-1640531527_i32 : i32
    %10 = vector.broadcast %9 : i32 to vector<8x32xi32>
    %11 = arith.xori %8, %10 : vector<8x32xi32>
    %c16_i32 = arith.constant 16 : i32
    %12 = vector.broadcast %c16_i32 : i32 to vector<8x32xi32>
    %13 = arith.shrui %11, %12 : vector<8x32xi32>
    %14 = arith.xori %11, %13 : vector<8x32xi32>
    %c2146121005_i32 = arith.constant 2146121005 : i32
    %15 = vector.broadcast %c2146121005_i32 : i32 to vector<8x32xi32>
    %16 = arith.muli %14, %15 : vector<8x32xi32>
    %c15_i32 = arith.constant 15 : i32
    %17 = vector.broadcast %c15_i32 : i32 to vector<8x32xi32>
    %18 = arith.shrui %16, %17 : vector<8x32xi32>
    %19 = arith.xori %16, %18 : vector<8x32xi32>
    %c-2073254261_i32 = arith.constant -2073254261 : i32
    %20 = vector.broadcast %c-2073254261_i32 : i32 to vector<8x32xi32>
    %21 = arith.muli %19, %20 : vector<8x32xi32>
    %c16_i32_0 = arith.constant 16 : i32
    %22 = vector.broadcast %c16_i32_0 : i32 to vector<8x32xi32>
    %23 = arith.shrui %21, %22 : vector<8x32xi32>
    %24 = arith.xori %21, %23 : vector<8x32xi32>
    %c8_i32_1 = arith.constant 8 : i32
    %25 = vector.broadcast %c8_i32_1 : i32 to vector<8x32xi32>
    %26 = arith.shrui %24, %25 : vector<8x32xi32>
    %27 = arith.sitofp %26 : vector<8x32xi32> to vector<8x32xf32>
    %cst = arith.constant 5.96046448E-8 : f32
    %28 = vector.broadcast %cst : f32 to vector<8x32xf32>
    %29 = arith.mulf %27, %28 : vector<8x32xf32>
    %cst_2 = arith.constant 2.000000e+00 : f32
    %30 = vector.broadcast %cst_2 : f32 to vector<8x32xf32>
    %31 = arith.mulf %29, %30 : vector<8x32xf32>
    %cst_3 = arith.constant 1.000000e+00 : f32
    %32 = vector.broadcast %cst_3 : f32 to vector<8x32xf32>
    %33 = arith.subf %31, %32 : vector<8x32xf32>
    %cst_4 = arith.constant 0.612372457 : f32
    %34 = vector.broadcast %cst_4 : f32 to vector<8x32xf32>
    %35 = arith.mulf %33, %34 : vector<8x32xf32>
    %c0_5 = arith.constant 0 : index
    %c0_6 = arith.constant 0 : index
    %36 = vector.load %arg2[%c0_5, %c0_6] : memref<8x32xf32, #tpu.memory_space<vmem>>, vector<8x32xf32>
    tpu.vector_store %arg2[%c0_5, %c0_6], %35 {strides = array<i32>} : memref<8x32xf32, #tpu.memory_space<vmem>>, vector<8x32xf32>,
    return
  }
  func.func @transform_0(%arg0: i32, %arg1: memref<1xi32, #tpu.memory_space<smem>>) -> (i32, i32) {
    %c0_i32 = arith.constant 0 : i32
    %c0_i32_0 = arith.constant 0 : i32
    return %arg0, %c0_i32 : i32, i32
  }
}

</mosaic_0001>

<bundles_post_ra>
// kernel: tpu_custom_call.1
= control target key start
LH: loop header
LB: loop body
LE: loop exit
PB: predicated region body
PF: predicated region fallthrough
CT: control target
= control target key end

     0   :  { %s327_s0 = inlined_call_operand.<no memory space> [shape: s32[1], index: 0, kind: input, shape index: {}]   ;;  %s328_s1 = inlined_call_operand.hbm [shape: f32[16,32], index: 1, kind: output, shape index: {}]  }
   0x1   :  { %6 = sst [smem:[#allocation3]] %s327_s0 }
   0x2   :  { %7 = vsyncpa [#allocation5], 0 }
   0x3   :  { %9 = vsyncpa [#allocation5 + $0x1], 0  ;;  %s245_s8 = smov 0   ;;  %s247_s9 = smov 0  }
   0x4   :  { %s249_s10 = smov 0  }
   0x5 LB: > { %s134_s0 = sadd.s32 4294967295, %s229_s10   ;;  %s262_s11 = sadd.s32 1, %s229_s10   ;;  %s229_s10 = sphi %s249_s10, %s333_s10   ;;  %s225_s9 = sphi %s247_s9, %s332_s9   ;;  %s221_s8 = sphi %s245_s8, %s331_s8  }
   0x6   : > { %s18_s12 = ssub.s32 %s229_s10, %s262_s11  ;;  %s21_s13 = sadd.s32 1, %s225_s9 }
   0x7   : > { %p19_p0 = scmp.eq.s32.totalorder %s18_s12, 0  ;;  %p135_p1 = scmp.ne.s32.totalorder %s18_s12, 0 }
   0x8   : > { %p25_p2 = scmp.eq.s32.totalorder %s229_s10, 1  ;;  %p30_p3 = scmp.ne.s32.totalorder %s225_s9, %s221_s8 }
   0x9   : > { %s271_s14 = scalar_select %p19_p0, %s225_s9, %s21_s13  }
   0xa   : > { %p273_p4 = por %p135_p1, %p25_p2  ;;  %p31_p5 = scmp.eq.s32.totalorder %s134_s0, 1 }
   0xb   : > { %p136_p7 = scmp.ge.s32.totalorder %s229_s10, 2 }
   0xc   : > { %p277_p6 = por %p31_p5, %p30_p3  ;;  %s138_s17 = sshll.u32 (!%p136_p7), %s229_s10, 3  ;;  %v50_v0 = vlaneseq (!%p136_p7)  ;;  %vm75_vm0 = vcmask (!%p136_p7), 261120  }
   0xd   : > { %40 = sbr.rel (%p136_p7) target bundleno = 66 (0x42), region = 12  ;;  %s49_s18 = sld [smem:[#allocation3]] (!%p136_p7)  ;;  %v52_v1 = vstv (!%p136_p7), %s138_s17 }
   0xe   : > { %v51_v2 = vshrl.u32 (!%p136_p7), %v50_v0, 7  ;;  %v55_v4 = vand.u32 (!%p136_p7), 127, %v50_v0  ;;  %s45_s20 = sand.u32 (!%p136_p7), 1, %s225_s9   ;;  %s141_s24 = sshll.u32 (!%p136_p7), %s229_s10, 7 }
   0xf   : > { %s137_s21 = sshll.u32 (!%p136_p7), %s45_s20, 3  ;;  %s290_s27 = scalar_lea.hbm (!%p136_p7), %s328_s1, %s141_s24 }
  0x10   : > { %v53_v3 = vadd.s32 (!%p136_p7), %v52_v1, %v51_v2  ;;  %s47_s22 = scalar_lea.vmem (!%p136_p7), [#allocation4], %s137_s21  ;;  %s78_s28 = scalar_lea.sflag (!%p136_p7), [#allocation5], %s45_s20 }
  0x11   : > { %s91_s23 = sshll.u32 (!%p136_p7), %s47_s22, 4  ;;  %s231_s30 = smov (!%p136_p7), [#allocation4]   ;;  %s285_s23 = int_to_ptr.vmem [resolvable:$true] %s91_s23 }
  0x12   : > { %v56_v5 = vmul.u32 (!%p136_p7), 32, %v53_v3  ;;  %s175_s29 = scalar_lea.vmem (!%p136_p7), %s285_s23, 128  ;;  %s179_s2 = sshll.u32 (!%p136_p7), %s231_s30, 4  ;;  %s180_s2 = int_to_ptr.vmem [resolvable:$false] %s179_s2 }
  0x13   : > { %s58_s19 = smul.u32 (!%p136_p7), 2654435769, %s49_s18  ;;  %p176_p8 = scmp.ne.s32.totalorder (!%p136_p7), %s285_s23, %s175_s29 }
  0x14   : > { %v57_v6 = vadd.s32 %v56_v5, %v55_v4  ;;  %s181_s3 = scalar_lea.vmem %s180_s2, 256  ;;  %p182_p11 = scmp.lt.s32.totalorder %s285_s23, %s180_s2 }
  0x15   : > { %v59_v7 = vstv %s58_s19  ;;  %p177_p9 = pnand %p176_p8, %p273_p4  ;;  %p183_p12 = scmp.lt.s32.totalorder %s181_s3, %s175_s29 }
  0x16   : > { %v60_v8 = vxor.u32 %v59_v7, %v57_v6 }
  0x17   : > { %p178_p10 = pneg %p177_p9  ;;  %p184_p13 = por %p183_p12, %p182_p11 }
  0x18   : > { %v61_v9 = vshrl.u32 %v60_v8, 16 }
  0x19   : > { %p185_p0 = pnand %p184_p13, %p178_p10 }
  0x1a   : > { %v62_v10 = vxor.u32 %v61_v9, %v60_v8 }
  0x1c   : > { %v63_v11 = vmul.u32 2146121005, %v62_v10 }
  0x1e   : > { %v64_v12 = vshrl.u32 %v63_v11, 15 }
  0x20   : > { %v65_v13 = vxor.u32 %v64_v12, %v63_v11 }
  0x22   : > { %v66_v14 = vmul.u32 2221713035, %v65_v13 }
  0x24   : > { %v67_v15 = vshrl.u32 %v66_v14, 16 }
  0x26   : > { %v68_v16 = vxor.u32 %v67_v15, %v66_v14 }
  0x28   : > { %v69_v17 = vshrl.u32 %v68_v16, 8 }
  0x2a   : > { %v70_v18 = vcvt.s32.f32 %v69_v17 }
  0x2c   : > { %v71_v19 = vmul.f32 5.9604645e-08, %v70_v18 }
  0x2e   : > { %v72_v20 = vmul.f32 2.0, %v71_v19 }
  0x30   : > { %v139_v21 = vadd.f32 -1.0, %v72_v20 }
  0x32   : > { %v74_v22 = vmul.f32 0.61237246, %v139_v21 }
  0x34   : > { %76 = vst.msk [vmem:[%s47_s22] sm:$0xff] %vm75_vm0, %v74_v22 }
  0x35   : > { %188 = shalt.err (!%p185_p0)
}
  0x36   : > { %s189_s4 = scalar_lea.hbm %s290_s27, 128  ;;  %s193_s7 = scalar_lea.hbm %s328_s1, 256 }
  0x37   : > { %p190_p1 = scmp.ne.s32.totalorder %s290_s27, %s189_s4  ;;  %p194_p5 = scmp.lt.u32.totalorder %s290_s27, %s328_s1 }
  0x38   : > { %p195_p7 = scmp.lt.u32.totalorder %s193_s7, %s189_s4  ;;  %p197_p9 = scmp.lt.u32.totalorder %s189_s4, %s290_s27 }
  0x39   : > { %p191_p2 = pnand %p190_p1, %p273_p4 }
  0x3a   : > { %p196_p8 = por %p195_p7, %p194_p5 }
  0x3b   : > { %p192_p3 = pneg %p191_p2 }
  0x3c   : > { %p198_p10 = por %p197_p9, %p196_p8 }
  0x3e   : > { %p199_p11 = pnand %p198_p10, %p192_p3 }
  0x40   : > { %202 = shalt.err (!%p199_p11)
}
  0x41   : > { %144 = dma.vmem_to_hbm [thread:$0]  (%p273_p4), %s285_s23, 128, %s290_s27, %s78_s28  }
  0x42 PF: > { %p150_p12 = scmp.ge.s32.totalorder %s229_s10, 1  ;;  %s103_s13 = sand.u32 1, %s221_s8  }
  0x43   : > { %s104_s17 = scalar_lea.sflag [#allocation5], %s103_s13 }
  0x44   : > { %p147_p13 = pnand %p150_p12, %p277_p6 }
  0x46   : > { %216 = dma.done.wait (!%p147_p13), %s104_s17, 128  }
  0x47   : > { %218 = vsyncadd (!%p147_p13), %s104_s17, 4294967168  ;;  %p12_p0 = scmp.ge.s32.totalorder %s262_s11, 3   ;;  %s331_s8 = smov %s225_s9 }
  0x48   : > { %s332_s9 = smov %s271_s14  ;;  %s333_s10 = smov %s262_s11 }
  0x49   :  { %14 = sbr.rel (!%p12_p0) target bundleno = 5 (0x5), region = 44 }
  0x50   :  { %109 = vsyncpa [#allocation5], 1 }
  0x51   :  { %111 = vsyncpa [#allocation5 + $0x1], 1 }

</bundles_post_ra>
